<compile_context>
chip_gen: v5e
topology: v5e:2x2
jax: 0.10.0
libtpu: 0.0.40
codegen_flags: <defaults>
</compile_context>

<pallas_src>
import jax
import jax.numpy as jnp
from jax.experimental import pallas as pl
from jax.experimental.pallas import tpu as pltpu

# ---------------- problem sizes (small, consistent with the forward) ----------
B = 2          # batch
C_IN = 4       # input image channels
H = W = 16     # spatial
C_CONV = 32    # conv output channels
E = 32         # image embedding size
H_LANG = 32    # lang_sender hidden
SEQ = 8        # utterance length
VOCAB = 16     # vocabulary size  (SEQ*VOCAB = 128 -> lane-dense output)
KH = KW = 3    # conv kernel
K_IM2COL = KH * KW * C_IN      # 36
K_PAD = 40                     # im2col K padded to a multiple of 8 sublanes
HW = H * W                     # 256
M_ROWS = B * HW                # 512

# packed parameter slab layout (all offsets 8-sublane aligned)
_WCONV_OFF = 0                 # rows [0, 40)  (rows 36..39 are zero padding)
_BCONV_OFF = 40                # row 40
_WFC1_OFF = 48                 # rows [48, 80)
_BFC1_OFF = 80                 # row 80
SLAB32_ROWS = 88               # slab of all width-32 params

_W2_OFF = 0                    # rows [0, 32)
_B2_OFF = 32                   # row 32
SLAB128_ROWS = 40              # slab of all width-128 params

_PREC = jax.lax.Precision.HIGHEST   # for host-side (XLA) matmuls


# ---------------------------- fused Pallas kernel ------------------------------
def _sender_kernel(patches_ref, p32_ref, p128_ref, out_ref):
    """Whole batch, one invocation, no grid.

    patches_ref: (B*H*W, K_PAD)        im2col'd padded image (f32, K zero-padded)
    p32_ref:     (SLAB32_ROWS, 32)     packed {wconv, bconv, w_fc1, b_fc1}
    p128_ref:    (SLAB128_ROWS, 128)   packed {w2, b2}
    out_ref:     (B, SEQ*VOCAB)        final utterance logits (flattened)
    """
    # carve parameters out of the packed slabs (static, 8-aligned slices)
    wconv = p32_ref[_WCONV_OFF:_WCONV_OFF + K_PAD, :]           # (40, 32)
    bconv = p32_ref[_BCONV_OFF:_BCONV_OFF + 1, :]               # (1, 32)
    w_fc1 = p32_ref[_WFC1_OFF:_WFC1_OFF + C_CONV, :]            # (32, 32)
    b_fc1 = p32_ref[_BFC1_OFF:_BFC1_OFF + 1, :]                 # (1, 32)
    w2 = p128_ref[_W2_OFF:_W2_OFF + H_LANG, :]                  # (32, 128)
    b2 = p128_ref[_B2_OFF:_B2_OFF + 1, :]                       # (1, 128)

    # conv (im2col) + bias + ReLU : one tall MXU matmul, M = B*H*W
    conv = jnp.dot(patches_ref[...], wconv,
                   preferred_element_type=jnp.float32)           # (512, 32)
    conv = jnp.maximum(conv + bconv, 0.0)

    # per-batch global average pool: sublane reductions (MXU / VALU have slack)
    inv_hw = jnp.float32(1.0 / HW)
    pooled = jnp.concatenate(
        [jnp.sum(conv[b * HW:(b + 1) * HW, :], axis=0, keepdims=True) * inv_hw
         for b in range(B)],
        axis=0)                                                  # (B, C_CONV)

    # fused (cnn-final-linear ∘ lang-linear-1) + tanh, then lang linear 2
    h = jnp.tanh(jnp.dot(pooled, w_fc1,
                         preferred_element_type=jnp.float32) + b_fc1)  # (B, H_LANG)
    out_ref[...] = jnp.dot(h, w2,
                           preferred_element_type=jnp.float32) + b2    # (B, 128)


# -------------------- one-time parameter packing (hoisted) ---------------------
def pack_params(p):
    """Reshape/fuse/pack the parameters into two lane-dense slabs.

    Called once per parameter set (NOT per forward call): wconv reshape,
    the algebraic fusion wfc@w1, and the slab packing are hoisted out of the
    per-call path.
    """
    wconv2d = p["wconv"].reshape(K_IM2COL, C_CONV).astype(jnp.float32)
    # fuse cnn final linear into lang first linear (no nonlinearity in between)
    w_fc1 = jnp.dot(p["wfc"], p["w1"], precision=_PREC)               # (C_CONV, H_LANG)
    b_fc1 = jnp.dot(p["bfc"], p["w1"], precision=_PREC) + p["b1"]     # (1, H_LANG)

    slab32 = jnp.zeros((SLAB32_ROWS, C_CONV), jnp.float32)
    slab32 = slab32.at[_WCONV_OFF:_WCONV_OFF + K_IM2COL, :].set(wconv2d)
    slab32 = slab32.at[_BCONV_OFF, :].set(p["bconv"][0])
    slab32 = slab32.at[_WFC1_OFF:_WFC1_OFF + C_CONV, :].set(w_fc1)
    slab32 = slab32.at[_BFC1_OFF, :].set(b_fc1[0])

    slab128 = jnp.zeros((SLAB128_ROWS, SEQ * VOCAB), jnp.float32)
    slab128 = slab128.at[_W2_OFF:_W2_OFF + H_LANG, :].set(p["w2"])
    slab128 = slab128.at[_B2_OFF, :].set(p["b2"][0])
    return slab32, slab128


# ------------------------------ jitted forward ----------------------------------
@jax.jit
def sender_pathway_forward(images_t, slab32, slab128):
    """images_t: (B, C_IN, H, W) NCHW, like the PyTorch module."""
    # NCHW -> NHWC, zero-pad spatial by 1 (conv padding=1). Layout plumbing only.
    x = jnp.transpose(images_t, (0, 2, 3, 1)).astype(jnp.float32)
    x = jnp.pad(x, ((0, 0), (1, 1), (1, 1), (0, 0)))

    # im2col: feature order (ky, kx, c_in) matches wconv.reshape(9*C_IN, C_CONV)
    cols = [x[:, ky:ky + H, kx:kx + W, :]
            for ky in range(KH) for kx in range(KW)]
    patches = jnp.concatenate(cols, axis=-1).reshape(M_ROWS, K_IM2COL)
    patches = jnp.pad(patches, ((0, 0), (0, K_PAD - K_IM2COL)))   # K: 36 -> 40

    out = pl.pallas_call(
        _sender_kernel,
        out_shape=jax.ShapeDtypeStruct((B, SEQ * VOCAB), jnp.float32),
        in_specs=[
            pl.BlockSpec(memory_space=pltpu.MemorySpace.VMEM),
            pl.BlockSpec(memory_space=pltpu.MemorySpace.VMEM),
            pl.BlockSpec(memory_space=pltpu.MemorySpace.VMEM),
        ],
        out_specs=pl.BlockSpec(memory_space=pltpu.MemorySpace.VMEM),
    )(patches, slab32, slab128)
    return out.reshape(B, SEQ, VOCAB)


# ---------------------------- pure-JAX reference --------------------------------
def _reference(images_t, p):
    x = jnp.transpose(images_t, (0, 2, 3, 1)).astype(jnp.float32)
    x = jnp.pad(x, ((0, 0), (1, 1), (1, 1), (0, 0)))
    acc = jnp.zeros((B, H, W, C_CONV), jnp.float32)
    for ky in range(KH):
        for kx in range(KW):
            acc = acc + jnp.einsum("bhwc,cd->bhwd",
                                   x[:, ky:ky + H, kx:kx + W, :],
                                   p["wconv"][ky, kx], precision=_PREC)
    acc = jnp.maximum(acc + p["bconv"][0], 0.0)
    pooled = acc.mean(axis=(1, 2))                                    # (B, C_CONV)
    emb = jnp.dot(pooled, p["wfc"], precision=_PREC) + p["bfc"][0]    # (B, E)
    h = jnp.tanh(jnp.dot(emb, p["w1"], precision=_PREC) + p["b1"][0])
    return (jnp.dot(h, p["w2"], precision=_PREC) + p["b2"][0]).reshape(B, SEQ, VOCAB)


# --------------------------------- main -----------------------------------------
if __name__ == "__main__":
    key = jax.random.PRNGKey(0)
    k_img, k1, k2, k3, k4, k5, k6, k7, k8 = jax.random.split(key, 9)

    images = jax.random.normal(k_img, (B, C_IN, H, W), jnp.float32)

    params = {
        "wconv": 0.1 * jax.random.normal(k1, (KH, KW, C_IN, C_CONV), jnp.float32),
        "bconv": 0.1 * jax.random.normal(k2, (1, C_CONV), jnp.float32),
        "wfc":   0.1 * jax.random.normal(k3, (C_CONV, E), jnp.float32),
        "bfc":   0.1 * jax.random.normal(k4, (1, E), jnp.float32),
        "w1":    0.1 * jax.random.normal(k5, (E, H_LANG), jnp.float32),
        "b1":    0.1 * jax.random.normal(k6, (1, H_LANG), jnp.float32),
        "w2":    0.1 * jax.random.normal(k7, (H_LANG, SEQ * VOCAB), jnp.float32),
        "b2":    0.1 * jax.random.normal(k8, (1, SEQ * VOCAB), jnp.float32),
    }

    # TODO(synk): sup_train_batch (optimizer step / grad clipping / CE loss) is
    # training machinery, not the forward pass, and is not translated to Pallas.

    # One-time parameter packing (outside the per-call path).
    slab32, slab128 = pack_params(params)

    utt_logits = jax.block_until_ready(
        sender_pathway_forward(images, slab32, slab128))
    assert utt_logits.shape == (B, SEQ, VOCAB)

    ref = _reference(images, params)
    assert jnp.allclose(utt_logits, ref, atol=1e-4, rtol=1e-4)

    print("KERNEL_OK")
</pallas_src>

<mosaic_0001>
module attributes {stable_mosaic.version = 11 : i64} {
  func.func @_sender_kernel(%arg0: memref<512x40xf32, #tpu.memory_space<vmem>>, %arg1: memref<88x32xf32, #tpu.memory_space<vmem>>, %arg2: memref<40x128xf32, #tpu.memory_space<vmem>>, %arg3: memref<2x128xf32, #tpu.memory_space<vmem>>) attributes {dimension_semantics = [], scalar_prefetch = 0 : i64, scratch_operands = 0 : i64, tpu.core_type = #tpu.core_type<tc>} {
    %c0 = arith.constant 0 : index
    %c0_0 = arith.constant 0 : index
    %0 = vector.load %arg1[%c0, %c0_0] : memref<88x32xf32, #tpu.memory_space<vmem>>, vector<40x32xf32>
    %c40 = arith.constant 40 : index
    %c0_1 = arith.constant 0 : index
    %1 = vector.load %arg1[%c40, %c0_1] : memref<88x32xf32, #tpu.memory_space<vmem>>, vector<1x32xf32>
    %c48 = arith.constant 48 : index
    %c0_2 = arith.constant 0 : index
    %2 = vector.load %arg1[%c48, %c0_2] : memref<88x32xf32, #tpu.memory_space<vmem>>, vector<32x32xf32>
    %c80 = arith.constant 80 : index
    %c0_3 = arith.constant 0 : index
    %3 = vector.load %arg1[%c80, %c0_3] : memref<88x32xf32, #tpu.memory_space<vmem>>, vector<1x32xf32>
    %c0_4 = arith.constant 0 : index
    %c0_5 = arith.constant 0 : index
    %4 = vector.load %arg2[%c0_4, %c0_5] : memref<40x128xf32, #tpu.memory_space<vmem>>, vector<32x128xf32>
    %c32 = arith.constant 32 : index
    %c0_6 = arith.constant 0 : index
    %5 = vector.load %arg2[%c32, %c0_6] : memref<40x128xf32, #tpu.memory_space<vmem>>, vector<1x128xf32>
    %c0_7 = arith.constant 0 : index
    %c0_8 = arith.constant 0 : index
    %6 = vector.load %arg0[%c0_7, %c0_8] : memref<512x40xf32, #tpu.memory_space<vmem>>, vector<512x40xf32>
    %cst = arith.constant dense<0.000000e+00> : vector<512x32xf32>
    %7 = tpu.matmul %6, %0, %cst {dimension_numbers = #tpu.dot_dimension_numbers<[1], [0], [0], [1], [0, 0, 1, 1], [], []>} : vector<512x40xf32>, vector<40x32xf32>, vector<512x32xf32> -> vector<512x32xf32>
    %8 = vector.broadcast %1 : vector<1x32xf32> to vector<512x32xf32>
    %9 = arith.addf %7, %8 : vector<512x32xf32>
    %cst_9 = arith.constant 0.000000e+00 : f32
    %10 = vector.broadcast %cst_9 : f32 to vector<512x32xf32>
    %11 = arith.maximumf %9, %10 : vector<512x32xf32>
    %12 = vector.extract_strided_slice %11 {offsets = [0, 0], sizes = [256, 32], strides = [1, 1]} : vector<512x32xf32> to vector<256x32xf32>
    %cst_10 = arith.constant dense<0.000000e+00> : vector<32xf32>
    %13 = vector.multi_reduction <add>, %12, %cst_10 [0] : vector<256x32xf32> to vector<32xf32>
    %14 = vector.shape_cast %13 : vector<32xf32> to vector<1x32xf32>
    %cst_11 = arith.constant 3.906250e-03 : f32
    %15 = vector.broadcast %cst_11 : f32 to vector<1x32xf32>
    %16 = arith.mulf %14, %15 : vector<1x32xf32>
    %17 = vector.extract_strided_slice %11 {offsets = [256, 0], sizes = [256, 32], strides = [1, 1]} : vector<512x32xf32> to vector<256x32xf32>
    %cst_12 = arith.constant dense<0.000000e+00> : vector<32xf32>
    %18 = vector.multi_reduction <add>, %17, %cst_12 [0] : vector<256x32xf32> to vector<32xf32>
    %19 = vector.shape_cast %18 : vector<32xf32> to vector<1x32xf32>
    %cst_13 = arith.constant 3.906250e-03 : f32
    %20 = vector.broadcast %cst_13 : f32 to vector<1x32xf32>
    %21 = arith.mulf %19, %20 : vector<1x32xf32>
    %22 = tpu.concatenate %16, %21 in 0 : vector<1x32xf32>, vector<1x32xf32> -> vector<2x32xf32>
    %cst_14 = arith.constant dense<0.000000e+00> : vector<2x32xf32>
    %23 = tpu.matmul %22, %2, %cst_14 {dimension_numbers = #tpu.dot_dimension_numbers<[1], [0], [0], [1], [0, 0, 1, 1], [], []>} : vector<2x32xf32>, vector<32x32xf32>, vector<2x32xf32> -> vector<2x32xf32>
    %24 = vector.broadcast %3 : vector<1x32xf32> to vector<2x32xf32>
    %25 = arith.addf %23, %24 : vector<2x32xf32>
    %26 = math.tanh %25 : vector<2x32xf32>
    %cst_15 = arith.constant dense<0.000000e+00> : vector<2x128xf32>
    %27 = tpu.matmul %26, %4, %cst_15 {dimension_numbers = #tpu.dot_dimension_numbers<[1], [0], [0], [1], [0, 0, 1, 1], [], []>} : vector<2x32xf32>, vector<32x128xf32>, vector<2x128xf32> -> vector<2x128xf32>
    %28 = vector.broadcast %5 : vector<1x128xf32> to vector<2x128xf32>
    %29 = arith.addf %27, %28 : vector<2x128xf32>
    %c0_16 = arith.constant 0 : index
    %c0_17 = arith.constant 0 : index
    %30 = vector.load %arg3[%c0_16, %c0_17] : memref<2x128xf32, #tpu.memory_space<vmem>>, vector<2x128xf32>
    tpu.vector_store %arg3[%c0_16, %c0_17], %29 {strides = array<i32>} : memref<2x128xf32, #tpu.memory_space<vmem>>, vector<2x128xf32>,
    return
  }
}

</mosaic_0001>

<bundles_post_ra>
// kernel: sender_pathway_forward.1
= control target key start
LH: loop header
LB: loop body
LE: loop exit
PB: predicated region body
PF: predicated region fallthrough
CT: control target
= control target key end

     0   :  { %vm95_vm0 = vcmask 326656   ;;  %vm561_vm1 = vcmask 261120   ;;  %vm702_vm2 = vcmask 1040384   ;;  %s1429_s1 = inlined_call_operand.vmem [shape: f32[88,32], index: 1, kind: input, shape index: {}]   ;;  %s1430_s0 = inlined_call_operand.vmem [shape: f32[512,40], index: 0, kind: input, shape index: {}]   ;;  %s1431_s2 = inlined_call_operand.vmem [shape: f32[40,128], index: 2, kind: input, shape index: {}]   ;;  %s1432_s3 = inlined_call_operand.vmem [shape: f32[2,128], index: 3, kind: output, shape index: {}]  }
   0x1   :  { %v18_v0 = vld [vmem:[%s1429_s1 + $0x20] sm:$0xff]  ;;  %v17_v1 = vld [vmem:[%s1429_s1 + $0x18] sm:$0xff]  ;;  %v16_v2 = vld [vmem:[%s1429_s1 + $0x10] sm:$0xff] }
   0x2   :  { %299 = vmatpush.msra.mxu0 %v18_v0  ;;  %824 = vmatpush.msra.mxu1 %v18_v0  ;;  %v15_v3 = vld [vmem:[%s1429_s1 + $0x8] sm:$0xff]  ;;  %v14_v4 = vld [vmem:[%s1429_s1] sm:$0xff]  ;;  %v48_v9 = vld [vmem:[%s1430_s0 + $0x90] sm:$0xff] }
   0x3   :  { %825 = vmatpush.msra.mxu2 %v18_v0  ;;  %826 = vmatpush.msra.mxu3 %v18_v0  ;;  %v30_v5 = vld [vmem:[%s1430_s0] sm:$0xff]  ;;  %v47_v6 = vld [vmem:[%s1430_s0 + $0x88] sm:$0xff]  ;;  %v64_v10 = vld [vmem:[%s1430_s0 + $0x110] sm:$0xff] }
   0x4   :  { %300 = vmatpush.msra.mxu0 %v17_v1  ;;  %827 = vmatpush.msra.mxu1 %v17_v1  ;;  %v63_v7 = vld [vmem:[%s1430_s0 + $0x108] sm:$0xff]  ;;  %v77_v11 = vld [vmem:[%s1430_s0 + $0x178] sm:$0xff]  ;;  %v32_v12 = vld [vmem:[%s1430_s0 + $0x10] sm:$0xff] }
   0x5   :  { %828 = vmatpush.msra.mxu2 %v17_v1  ;;  %829 = vmatpush.msra.mxu3 %v17_v1  ;;  %v31_v8 = vld [vmem:[%s1430_s0 + $0x8] sm:$0xff]  ;;  %v49_v13 = vld [vmem:[%s1430_s0 + $0x98] sm:$0xff]  ;;  %v78_v15 = vld [vmem:[%s1430_s0 + $0x180] sm:$0xff] }
   0x6   :  { %301 = vmatpush.msra.mxu0 %v16_v2  ;;  %830 = vmatpush.msra.mxu1 %v16_v2  ;;  %v65_v14 = vld [vmem:[%s1430_s0 + $0x118] sm:$0xff]  ;;  %v50_v17 = vld [vmem:[%s1430_s0 + $0xa0] sm:$0xff]  ;;  %v79_v19 = vld [vmem:[%s1430_s0 + $0x188] sm:$0xff] }
   0x7   :  { %831 = vmatpush.msra.mxu2 %v16_v2  ;;  %832 = vmatpush.msra.mxu3 %v16_v2  ;;  %v33_v16 = vld [vmem:[%s1430_s0 + $0x18] sm:$0xff]  ;;  %v66_v18 = vld [vmem:[%s1430_s0 + $0x120] sm:$0xff]  ;;  %v51_v21 = vld [vmem:[%s1430_s0 + $0xa8] sm:$0xff] }
   0x8   :  { %302 = vmatpush.msra.mxu0 %v15_v3  ;;  %833 = vmatpush.msra.mxu1 %v15_v3  ;;  %v34_v20 = vld [vmem:[%s1430_s0 + $0x20] sm:$0xff]  ;;  %v67_v22 = vld [vmem:[%s1430_s0 + $0x128] sm:$0xff]  ;;  %v80_v23 = vld [vmem:[%s1430_s0 + $0x190] sm:$0xff] }
   0x9   :  { %834 = vmatpush.msra.mxu2 %v15_v3  ;;  %835 = vmatpush.msra.mxu3 %v15_v3  ;;  %v35_v24 = vld [vmem:[%s1430_s0 + $0x28] sm:$0xff]  ;;  %v52_v25 = vld [vmem:[%s1430_s0 + $0xb0] sm:$0xff]  ;;  %v81_v27 = vld [vmem:[%s1430_s0 + $0x198] sm:$0xff] }
   0xa   :  { %303 = vmatpush.msra.mxu0 %v14_v4  ;;  %836 = vmatpush.msra.mxu1 %v14_v4  ;;  %v68_v26 = vld [vmem:[%s1430_s0 + $0x130] sm:$0xff]  ;;  %v53_v29 = vld [vmem:[%s1430_s0 + $0xb8] sm:$0xff]  ;;  %v82_v31 = vld [vmem:[%s1430_s0 + $0x1a0] sm:$0xff] }
   0xb   :  { %758 = vmatmul.msk.f32.vlgmr.msra.gmra.mxu0 %vm95_vm0, %v30_v5  ;;  %775 = vmatmul.msk.f32.vlgmr.msra.gmra.mxu1 %vm95_vm0, %v47_v6  ;;  %v36_v28 = vld [vmem:[%s1430_s0 + $0x30] sm:$0xff]  ;;  %v69_v30 = vld [vmem:[%s1430_s0 + $0x138] sm:$0xff]  ;;  %v54_v33 = vld [vmem:[%s1430_s0 + $0xc0] sm:$0xff] }
   0xc   :  { %837 = vmatpush.msra.mxu2 %v14_v4  ;;  %838 = vmatpush.msra.mxu3 %v14_v4  ;;  %v37_v32 = vld [vmem:[%s1430_s0 + $0x38] sm:$0xff]  ;;  %v70_v34 = vld [vmem:[%s1430_s0 + $0x140] sm:$0xff]  ;;  %v83_v35 = vld [vmem:[%s1430_s0 + $0x1a8] sm:$0xff] }
   0xd   :  { %791 = vmatmul.msk.f32.vlgmr.msra.gmra.mxu2 %vm95_vm0, %v63_v7  ;;  %805 = vmatmul.msk.f32.vlgmr.msra.gmra.mxu3 %vm95_vm0, %v77_v11  ;;  %v38_v36 = vld [vmem:[%s1430_s0 + $0x40] sm:$0xff]  ;;  %v55_v37 = vld [vmem:[%s1430_s0 + $0xc8] sm:$0xff]  ;;  %v84_v39 = vld [vmem:[%s1430_s0 + $0x1b0] sm:$0xff] }
   0xe   :  { %v71_v38 = vld [vmem:[%s1430_s0 + $0x148] sm:$0xff]  ;;  %v56_v41 = vld [vmem:[%s1430_s0 + $0xd0] sm:$0xff]  ;;  %v85_v43 = vld [vmem:[%s1430_s0 + $0x1b8] sm:$0xff] }
   0xf   :  { %v39_v40 = vld [vmem:[%s1430_s0 + $0x48] sm:$0xff]  ;;  %v72_v42 = vld [vmem:[%s1430_s0 + $0x150] sm:$0xff]  ;;  %v57_v45 = vld [vmem:[%s1430_s0 + $0xd8] sm:$0xff] }
  0x10   :  { %v40_v44 = vld [vmem:[%s1430_s0 + $0x50] sm:$0xff]  ;;  %v73_v46 = vld [vmem:[%s1430_s0 + $0x158] sm:$0xff]  ;;  %v86_v47 = vld [vmem:[%s1430_s0 + $0x1c0] sm:$0xff] }
  0x11   :  { %v41_v48 = vld [vmem:[%s1430_s0 + $0x58] sm:$0xff]  ;;  %v58_v49 = vld [vmem:[%s1430_s0 + $0xe0] sm:$0xff]  ;;  %v59_v52 = vld [vmem:[%s1430_s0 + $0xe8] sm:$0xff] }
  0x12   :  { %v74_v50 = vld [vmem:[%s1430_s0 + $0x160] sm:$0xff]  ;;  %v87_v53 = vld [vmem:[%s1430_s0 + $0x1c8] sm:$0xff]  ;;  %v60_v56 = vld [vmem:[%s1430_s0 + $0xf0] sm:$0xff] }
  0x13   :  { %759 = vmatmul.msk.f32.gmra.mxu0 %vm95_vm0, %v31_v8  ;;  %776 = vmatmul.msk.f32.gmra.mxu1 %vm95_vm0, %v48_v9  ;;  %v42_v51 = vld [vmem:[%s1430_s0 + $0x60] sm:$0xff]  ;;  %v75_v54 = vld [vmem:[%s1430_s0 + $0x168] sm:$0xff]  ;;  %v88_v57 = vld [vmem:[%s1430_s0 + $0x1d0] sm:$0xff] }
  0x14   :  { %v43_v55 = vld [vmem:[%s1430_s0 + $0x68] sm:$0xff]  ;;  %v76_v58 = vld [vmem:[%s1430_s0 + $0x170] sm:$0xff]  ;;  %v61_v60 = vld [vmem:[%s1430_s0 + $0xf8] sm:$0xff] }
  0x15   :  { %792 = vmatmul.msk.f32.gmra.mxu2 %vm95_vm0, %v64_v10  ;;  %806 = vmatmul.msk.f32.gmra.mxu3 %vm95_vm0, %v78_v15  ;;  %v44_v59 = vld [vmem:[%s1430_s0 + $0x70] sm:$0xff]  ;;  %v89_v61 = vld [vmem:[%s1430_s0 + $0x1d8] sm:$0xff]  ;;  %v62_v63 = vld [vmem:[%s1430_s0 + $0x100] sm:$0xff] }
  0x16   :  { %v45_v62 = vld [vmem:[%s1430_s0 + $0x78] sm:$0xff]  ;;  %v90_v0 = vld [vmem:[%s1430_s0 + $0x1e0] sm:$0xff]  ;;  %v91_v4 = vld [vmem:[%s1430_s0 + $0x1e8] sm:$0xff] }
  0x17   :  { %v46_v3 = vld [vmem:[%s1430_s0 + $0x80] sm:$0xff]  ;;  %v1130_v5 = vld [vmem:[%s1429_s1 + $0x28] ss:$0 sm:$0xff]  ;;  %v92_v10 = vld [vmem:[%s1430_s0 + $0x1f0] sm:$0xff] }
  0x1b   :  { %760 = vmatmul.msk.f32.gmra.mxu0 %vm95_vm0, %v32_v12  ;;  %777 = vmatmul.msk.f32.gmra.mxu1 %vm95_vm0, %v49_v13 }
  0x1d   :  { %793 = vmatmul.msk.f32.gmra.mxu2 %vm95_vm0, %v65_v14  ;;  %807 = vmatmul.msk.f32.gmra.mxu3 %vm95_vm0, %v79_v19  ;;  %v93_v19 = vld [vmem:[%s1430_s0 + $0x1f8] sm:$0xff] }
  0x23   :  { %761 = vmatmul.msk.f32.gmra.mxu0 %vm95_vm0, %v33_v16  ;;  %778 = vmatmul.msk.f32.gmra.mxu1 %vm95_vm0, %v50_v17 }
  0x25   :  { %794 = vmatmul.msk.f32.gmra.mxu2 %vm95_vm0, %v66_v18  ;;  %808 = vmatmul.msk.f32.gmra.mxu3 %vm95_vm0, %v80_v23 }
  0x2b   :  { %762 = vmatmul.msk.f32.gmra.mxu0 %vm95_vm0, %v34_v20  ;;  %779 = vmatmul.msk.f32.gmra.mxu1 %vm95_vm0, %v51_v21 }
  0x2d   :  { %795 = vmatmul.msk.f32.gmra.mxu2 %vm95_vm0, %v67_v22  ;;  %809 = vmatmul.msk.f32.gmra.mxu3 %vm95_vm0, %v81_v27 }
  0x33   :  { %763 = vmatmul.msk.f32.gmra.mxu0 %vm95_vm0, %v35_v24  ;;  %780 = vmatmul.msk.f32.gmra.mxu1 %vm95_vm0, %v52_v25 }
  0x35   :  { %796 = vmatmul.msk.f32.gmra.mxu2 %vm95_vm0, %v68_v26  ;;  %810 = vmatmul.msk.f32.gmra.mxu3 %vm95_vm0, %v82_v31 }
  0x3b   :  { %764 = vmatmul.msk.f32.gmra.mxu0 %vm95_vm0, %v36_v28  ;;  %781 = vmatmul.msk.f32.gmra.mxu1 %vm95_vm0, %v53_v29 }
  0x3d   :  { %797 = vmatmul.msk.f32.gmra.mxu2 %vm95_vm0, %v69_v30  ;;  %811 = vmatmul.msk.f32.gmra.mxu3 %vm95_vm0, %v83_v35 }
  0x43   :  { %765 = vmatmul.msk.f32.gmra.mxu0 %vm95_vm0, %v37_v32  ;;  %782 = vmatmul.msk.f32.gmra.mxu1 %vm95_vm0, %v54_v33 }
  0x45   :  { %798 = vmatmul.msk.f32.gmra.mxu2 %vm95_vm0, %v70_v34  ;;  %812 = vmatmul.msk.f32.gmra.mxu3 %vm95_vm0, %v84_v39 }
  0x4b   :  { %766 = vmatmul.msk.f32.gmra.mxu0 %vm95_vm0, %v38_v36  ;;  %783 = vmatmul.msk.f32.gmra.mxu1 %vm95_vm0, %v55_v37 }
  0x4d   :  { %799 = vmatmul.msk.f32.gmra.mxu2 %vm95_vm0, %v71_v38  ;;  %813 = vmatmul.msk.f32.gmra.mxu3 %vm95_vm0, %v85_v43 }
  0x53   :  { %767 = vmatmul.msk.f32.gmra.mxu0 %vm95_vm0, %v39_v40  ;;  %784 = vmatmul.msk.f32.gmra.mxu1 %vm95_vm0, %v56_v41 }
  0x55   :  { %800 = vmatmul.msk.f32.gmra.mxu2 %vm95_vm0, %v72_v42  ;;  %814 = vmatmul.msk.f32.gmra.mxu3 %vm95_vm0, %v86_v47 }
  0x5b   :  { %768 = vmatmul.msk.f32.gmra.mxu0 %vm95_vm0, %v40_v44  ;;  %785 = vmatmul.msk.f32.gmra.mxu1 %vm95_vm0, %v57_v45 }
  0x5d   :  { %801 = vmatmul.msk.f32.gmra.mxu2 %vm95_vm0, %v73_v46  ;;  %815 = vmatmul.msk.f32.gmra.mxu3 %vm95_vm0, %v87_v53 }
  0x63   :  { %769 = vmatmul.msk.f32.gmra.mxu0 %vm95_vm0, %v41_v48  ;;  %786 = vmatmul.msk.f32.gmra.mxu1 %vm95_vm0, %v58_v49  ;;  %v23_v49 = vld [vmem:[%s1429_s1 + $0x48] sm:$0xff] }
  0x64   :  { %720 = vmatpush.msrb.mxu1 %v23_v49 }
  0x65   :  { %802 = vmatmul.msk.f32.gmra.mxu2 %vm95_vm0, %v74_v50  ;;  %816 = vmatmul.msk.f32.gmra.mxu3 %vm95_vm0, %v88_v57 }
  0x6b   :  { %770 = vmatmul.msk.f32.gmra.mxu0 %vm95_vm0, %v42_v51  ;;  %787 = vmatmul.msk.f32.gmra.mxu1 %vm95_vm0, %v59_v52 }
  0x6d   :  { %803 = vmatmul.msk.f32.gmra.mxu2 %vm95_vm0, %v75_v54  ;;  %817 = vmatmul.msk.f32.gmra.mxu3 %vm95_vm0, %v89_v61 }
  0x73   :  { %771 = vmatmul.msk.f32.gmra.mxu0 %vm95_vm0, %v43_v55  ;;  %788 = vmatmul.msk.f32.gmra.mxu1 %vm95_vm0, %v60_v56 }
  0x75   :  { %804 = vmatmul.msk.f32.gmra.mxu2 %vm95_vm0, %v76_v58  ;;  %818 = vmatmul.msk.f32.gmra.mxu3 %vm95_vm0, %v90_v0 }
  0x7b   :  { %772 = vmatmul.msk.f32.gmra.mxu0 %vm95_vm0, %v44_v59  ;;  %789 = vmatmul.msk.f32.gmra.mxu1 %vm95_vm0, %v61_v60 }
  0x7d   :  { %819 = vmatmul.msk.f32.gmra.mxu3 %vm95_vm0, %v91_v4 }
  0x83   :  { %773 = vmatmul.msk.f32.gmra.mxu0 %vm95_vm0, %v45_v62  ;;  %790 = vmatmul.msk.f32.gmra.mxu1 %vm95_vm0, %v62_v63 }
  0x85   :  { %820 = vmatmul.msk.f32.gmra.mxu3 %vm95_vm0, %v92_v10 }
  0x88   :  { %v305_v1 = vpop.f32.mrf.mxu0  ;;  %v1119_v2 = vpop.f32.mrf.mxu1 }
  0x89   :  { %v306_v6 = vadd.f32 %v1130_v5, %v305_v1  ;;  %v22_v1 = vld [vmem:[%s1429_s1 + $0x40] sm:$0xff] }
  0x8a   :  { %721 = vmatpush.msrb.mxu1 %v22_v1 }
  0x8b   :  { %774 = vmatmul.msk.f32.gmra.mxu0 %vm95_vm0, %v46_v3  ;;  %v497_v7 = vmax.f32 %v306_v6, 0.0 }
  0x8d   :  { %v562_v13 = vsel %vm561_vm1, %v497_v7, 0.0  ;;  %821 = vmatmul.msk.f32.gmra.mxu3 %vm95_vm0, %v93_v19 }
  0x90   :  { %v308_v8 = vpop.f32.mrf.mxu0  ;;  %v1135_v9 = vpop.f32.mrf.mxu1 }
  0x91   :  { %v309_v11 = vadd.f32 %v1130_v5, %v308_v8  ;;  %v1142_v12 = vpop.f32.mrf.mxu2  ;;  %v1155_v23 = vpop.f32.mrf.mxu3 }
  0x93   :  { %v498_v14 = vmax.f32 %v309_v11, 0.0 }
  0x95   :  { %v563_v15 = vsel %vm561_vm1, %v498_v14, 0.0 }
  0x96   :  { %v564_v16 = vadd.f32 %v563_v15, %v562_v13 }
  0x98   :  { %v311_v17 = vpop.f32.mrf.mxu0  ;;  %v1146_v18 = vpop.f32.mrf.mxu1 }
  0x99   :  { %v312_v20 = vadd.f32 %v1130_v5, %v311_v17  ;;  %v1153_v21 = vpop.f32.mrf.mxu2  ;;  %v1163_v31 = vpop.f32.mrf.mxu3 }
  0x9b   :  { %v499_v22 = vmax.f32 %v312_v20, 0.0 }
  0x9d   :  { %v565_v24 = vsel %vm561_vm1, %v499_v22, 0.0 }
  0x9e   :  { %v566_v25 = vadd.f32 %v565_v24, %v564_v16 }
  0xa0   :  { %v314_v26 = vpop.f32.mrf.mxu0  ;;  %v1158_v27 = vpop.f32.mrf.mxu1 }
  0xa1   :  { %v315_v28 = vadd.f32 %v1130_v5, %v314_v26  ;;  %v1161_v30 = vpop.f32.mrf.mxu2  ;;  %v1169_v38 = vpop.f32.mrf.mxu3 }
  0xa3   :  { %v500_v29 = vmax.f32 %v315_v28, 0.0 }
  0xa5   :  { %v567_v32 = vsel %vm561_vm1, %v500_v29, 0.0 }
  0xa6   :  { %v568_v33 = vadd.f32 %v567_v32, %v566_v25 }
  0xa8   :  { %v317_v34 = vpop.f32.mrf.mxu0  ;;  %v1166_v35 = vpop.f32.mrf.mxu1 }
  0xa9   :  { %v318_v36 = vadd.f32 %v1130_v5, %v317_v34  ;;  %v1172_v40 = vpop.f32.mrf.mxu2  ;;  %v1177_v46 = vpop.f32.mrf.mxu3 }
  0xab   :  { %v501_v37 = vmax.f32 %v318_v36, 0.0 }
  0xad   :  { %v569_v39 = vsel %vm561_vm1, %v501_v37, 0.0 }
  0xae   :  { %v570_v41 = vadd.f32 %v569_v39, %v568_v33 }
  0xb0   :  { %v320_v42 = vpop.f32.mrf.mxu0  ;;  %v1174_v43 = vpop.f32.mrf.mxu1 }
  0xb1   :  { %v321_v44 = vadd.f32 %v1130_v5, %v320_v42  ;;  %v1183_v50 = vpop.f32.mrf.mxu2  ;;  %v1187_v53 = vpop.f32.mrf.mxu3 }
  0xb3   :  { %v502_v45 = vmax.f32 %v321_v44, 0.0 }
  0xb5   :  { %v571_v47 = vsel %vm561_vm1, %v502_v45, 0.0 }
  0xb6   :  { %v572_v48 = vadd.f32 %v571_v47, %v570_v41 }
  0xb8   :  { %v323_v51 = vpop.f32.mrf.mxu0  ;;  %v1185_v52 = vpop.f32.mrf.mxu1 }
  0xb9   :  { %v1191_v56 = vpop.f32.mrf.mxu2  ;;  %v1193_v57 = vpop.f32.mrf.mxu3  ;;  %v324_v17 = vadd.f32 %v1130_v5, %v323_v51 }
  0xbb   :  { %v503_v24 = vmax.f32 %v324_v17, 0.0  ;;  %v408_v17 = vadd.f32 %v1130_v5, %v1153_v21 }
  0xbd   :  { %v573_v32 = vsel %vm561_vm1, %v503_v24, 0.0 }
  0xbe   :  { %v574_v45 = vadd.f32 %v573_v32, %v572_v48 }
  0xc0   :  { %v326_v54 = vpop.f32.mrf.mxu0  ;;  %v1189_v55 = vpop.f32.mrf.mxu1 }
  0xc1   :  { %v1197_v60 = vpop.f32.mrf.mxu2  ;;  %v1199_v61 = vpop.f32.mrf.mxu3  ;;  %v327_v22 = vadd.f32 %v1130_v5, %v326_v54  ;;  %v405_v54 = vadd.f32 %v1130_v5, %v1142_v12  ;;  %v411_v12 = vadd.f32 %v1130_v5, %v1161_v30  ;;  %v414_v30 = vadd.f32 %v1130_v5, %v1172_v40 }
  0xc2   :  { %v357_v40 = vadd.f32 %v1130_v5, %v1119_v2 }
  0xc3   :  { %v504_v28 = vmax.f32 %v327_v22, 0.0 }
  0xc5   :  { %v575_v41 = vsel %vm561_vm1, %v504_v28, 0.0 }
  0xc8   :  { %v329_v58 = vpop.f32.mrf.mxu0  ;;  %v1195_v59 = vpop.f32.mrf.mxu1 }
  0xc9   :  { %v1203_v0 = vpop.f32.mrf.mxu2  ;;  %v1210_v6 = vpop.f32.mrf.mxu3  ;;  %v330_v25 = vadd.f32 %v1130_v5, %v329_v58  ;;  %v576_v58 = vadd.f32 %v575_v41, %v574_v45  ;;  %v531_v41 = vmax.f32 %v408_v17, 0.0 }
  0xcb   :  { %v505_v33 = vmax.f32 %v330_v25, 0.0  ;;  %v530_v25 = vmax.f32 %v405_v54, 0.0  ;;  %v532_v54 = vmax.f32 %v411_v12, 0.0  ;;  %v420_v12 = vadd.f32 %v1130_v5, %v1191_v56 }
  0xcc   :  { %v514_v56 = vmax.f32 %v357_v40, 0.0 }
  0xcd   :  { %v577_v47 = vsel %vm561_vm1, %v505_v33, 0.0 }
  0xce   :  { %v578_v22 = vadd.f32 %v577_v47, %v576_v58 }
  0xd0   :  { %v332_v62 = vpop.f32.mrf.mxu0  ;;  %v1201_v63 = vpop.f32.mrf.mxu1 }
  0xd1   :  { %v1212_v7 = vpop.f32.mrf.mxu2  ;;  %v1216_v11 = vpop.f32.mrf.mxu3  ;;  %v333_v29 = vadd.f32 %v1130_v5, %v332_v62 }
  0xd3   :  { %v506_v42 = vmax.f32 %v333_v29, 0.0 }
  0xd5   :  { %v579_v62 = vsel %vm561_vm1, %v506_v42, 0.0 }
  0xd6   :  { %v580_v28 = vadd.f32 %v579_v62, %v578_v22  ;;  %v417_v62 = vadd.f32 %v1130_v5, %v1183_v50  ;;  %v360_v22 = vadd.f32 %v1130_v5, %v1135_v9 }
  0xd8   :  { %v335_v3 = vpop.f32.mrf.mxu0  ;;  %v1208_v4 = vpop.f32.mrf.mxu1  ;;  %v534_v9 = vmax.f32 %v417_v62, 0.0 }
  0xd9   :  { %v1220_v15 = vpop.f32.mrf.mxu2  ;;  %v1222_v16 = vpop.f32.mrf.mxu3  ;;  %v336_v34 = vadd.f32 %v1130_v5, %v335_v3 }
  0xdb   :  { %v507_v49 = vmax.f32 %v336_v34, 0.0 }
  0xdd   :  { %v581_v48 = vsel %vm561_vm1, %v507_v49, 0.0 }
  0xde   :  { %v582_v42 = vadd.f32 %v581_v48, %v580_v28  ;;  %v363_v28 = vadd.f32 %v1130_v5, %v1146_v18 }
  0xe0   :  { %v338_v8 = vpop.f32.mrf.mxu0  ;;  %v1214_v10 = vpop.f32.mrf.mxu1 }
  0xe1   :  { %v1229_v26 = vpop.f32.mrf.mxu2  ;;  %v1234_v36 = vpop.f32.mrf.mxu3  ;;  %v339_v44 = vadd.f32 %v1130_v5, %v338_v8 }
  0xe3   :  { %v508_v1 = vmax.f32 %v339_v44, 0.0 }
  0xe8   :  { %v341_v13 = vpop.f32.mrf.mxu0  ;;  %v1218_v14 = vpop.f32.mrf.mxu1 }
  0xe9   :  { %v342_v51 = vadd.f32 %v1130_v5, %v341_v13  ;;  %v1248_v8 = vpop.f32.mrf.mxu2  ;;  %v1260_v44 = vpop.f32.mrf.mxu3 }
  0xeb   :  { %v509_v24 = vmax.f32 %v342_v51, 0.0  ;;  %v633_v51 = vsel %vm561_vm1, %v530_v25, 0.0  ;;  %v533_v25 = vmax.f32 %v414_v30, 0.0 }
  0xed   :  { %v585_v45 = vsel %vm561_vm1, %v509_v24, 0.0  ;;  %v639_v30 = vsel %vm561_vm1, %v533_v25, 0.0 }
  0xf0   :  { %v344_v19 = vpop.f32.mrf.mxu0  ;;  %v1225_v20 = vpop.f32.mrf.mxu1 }
  0xf1   :  { %v345_v3 = vadd.f32 %v1130_v5, %v344_v19  ;;  %v583_v19 = vsel %vm561_vm1, %v508_v1, 0.0  ;;  %v1290_v62 = vpop.f32.mrf.mxu3 }
  0xf2   :  { %v584_v58 = vadd.f32 %v583_v19, %v582_v42  ;;  %v366_v42 = vadd.f32 %v1130_v5, %v1158_v27  ;;  %v429_v27 = vadd.f32 %v1130_v5, %v1212_v7  ;;  %v372_v7 = vadd.f32 %v1130_v5, %v1174_v43 }
  0xf3   :  { %v510_v33 = vmax.f32 %v345_v3, 0.0 }
  0xf4   :  { %v586_v48 = vadd.f32 %v585_v45, %v584_v58  ;;  %v535_v45 = vmax.f32 %v420_v12, 0.0  ;;  %v517_v40 = vmax.f32 %v366_v42, 0.0  ;;  %v432_v12 = vadd.f32 %v1130_v5, %v1220_v15 }
  0xf5   :  { %v587_v1 = vsel %vm561_vm1, %v510_v33, 0.0  ;;  %v440_v33 = vpop.f32.mrf.mxu2 }
  0xf6   :  { %v539_v42 = vmax.f32 %v432_v12, 0.0  ;;  %v450_v12 = vadd.f32 %v1130_v5, %v1163_v31  ;;  %v390_v31 = vadd.f32 %v1130_v5, %v1214_v10  ;;  %v393_v10 = vadd.f32 %v1130_v5, %v1218_v14 }
  0xf8   :  { %v347_v37 = vpop.f32.mrf.mxu0  ;;  %v1236_v39 = vpop.f32.mrf.mxu1 }
  0xf9   :  { %v348_v13 = vadd.f32 %v1130_v5, %v347_v37  ;;  %v21_v37 = vld [vmem:[%s1429_s1 + $0x38] sm:$0xff] }
  0xfa   :  { %722 = vmatpush.msrb.mxu1 %v21_v37 }
  0xfb   :  { %v511_v47 = vmax.f32 %v348_v13, 0.0  ;;  %v635_v13 = vsel %vm561_vm1, %v531_v41, 0.0 }
  0xfd   :  { %v589_v50 = vsel %vm561_vm1, %v511_v47, 0.0  ;;  %v426_v47 = vadd.f32 %v1130_v5, %v1203_v0 }
  0xff   :  { %v537_v25 = vmax.f32 %v426_v47, 0.0 }
 0x100   :  { %v350_v29 = vpop.f32.mrf.mxu0  ;;  %v401_v32 = vpop.f32.mrf.mxu1 }
 0x101   :  { %v351_v21 = vadd.f32 %v1130_v5, %v350_v29  ;;  %v402_v34 = vadd.f32 %v1130_v5, %v401_v32  ;;  %v637_v29 = vsel %vm561_vm1, %v532_v54, 0.0  ;;  %v588_v32 = vadd.f32 %v587_v1, %v586_v48 }
 0x102   :  { %v516_v54 = vmax.f32 %v363_v28, 0.0  ;;  %v641_v1 = vsel %vm561_vm1, %v534_v9, 0.0  ;;  %v369_v48 = vadd.f32 %v1130_v5, %v1166_v35  ;;  %v601_v9 = vsel %vm561_vm1, %v517_v40, 0.0 }
 0x103   :  { %v529_v49 = vmax.f32 %v402_v34, 0.0  ;;  %v512_v3 = vmax.f32 %v351_v21, 0.0  ;;  %v423_v21 = vadd.f32 %v1130_v5, %v1197_v60  ;;  %v590_v37 = vadd.f32 %v589_v50, %v588_v32 }
 0x104   :  { %v599_v32 = vsel %vm561_vm1, %v516_v54, 0.0  ;;  %v647_v43 = vsel %vm561_vm1, %v537_v25, 0.0 }
 0x105   :  { %v632_v17 = vsel %vm561_vm1, %v529_v49, 0.0  ;;  %v591_v34 = vsel %vm561_vm1, %v512_v3, 0.0  ;;  %v536_v3 = vmax.f32 %v423_v21, 0.0  ;;  %v518_v21 = vmax.f32 %v369_v48, 0.0 }
 0x106   :  { %v634_v24 = vadd.f32 %v633_v51, %v632_v17  ;;  %v515_v51 = vmax.f32 %v360_v22, 0.0  ;;  %v592_v60 = vadd.f32 %v591_v34, %v590_v37  ;;  %v595_v22 = vsel %vm561_vm1, %v514_v56, 0.0 }
 0x107   :  { %v645_v35 = vsel %vm561_vm1, %v536_v3, 0.0  ;;  %v375_v56 = vadd.f32 %v1130_v5, %v1185_v52  ;;  %v438_v37 = vadd.f32 %v1130_v5, %v1248_v8  ;;  %v603_v52 = vsel %vm561_vm1, %v518_v21, 0.0 }
 0x108   :  { %v636_v2 = vadd.f32 %v635_v13, %v634_v24  ;;  %v353_v19 = vpop.f32.mrf.mxu0  ;;  %v643_v13 = vsel %vm561_vm1, %v535_v45, 0.0  ;;  %v597_v50 = vsel %vm561_vm1, %v515_v51, 0.0  ;;  %v441_v51 = vadd.f32 %v1130_v5, %v440_v33 }
 0x109   :  { %v354_v41 = vadd.f32 %v1130_v5, %v353_v19  ;;  %v435_v19 = vadd.f32 %v1130_v5, %v1229_v26  ;;  %v520_v3 = vmax.f32 %v375_v56, 0.0 }
 0x10a   :  { %v638_v18 = vadd.f32 %v637_v29, %v636_v2  ;;  %v538_v2 = vmax.f32 %v429_v27, 0.0  ;;  %v651_v27 = vsel %vm561_vm1, %v539_v42, 0.0 }
 0x10b   :  { %v513_v49 = vmax.f32 %v354_v41, 0.0  ;;  %v443_v41 = vpop.f32.mrf.mxu2 }
 0x10c   :  { %v640_v58 = vadd.f32 %v639_v30, %v638_v18  ;;  %v519_v18 = vmax.f32 %v372_v7, 0.0  ;;  %v378_v30 = vadd.f32 %v1130_v5, %v1189_v55  ;;  %v649_v47 = vsel %vm561_vm1, %v538_v2, 0.0 }
 0x10d   :  { %v593_v17 = vsel %vm561_vm1, %v513_v49, 0.0  ;;  %v540_v49 = vmax.f32 %v435_v19, 0.0  ;;  %v444_v54 = vadd.f32 %v1130_v5, %v443_v41  ;;  %v381_v55 = vadd.f32 %v1130_v5, %v1195_v59 }
 0x10e   :  { %v642_v0 = vadd.f32 %v641_v1, %v640_v58  ;;  %v594_v24 = vadd.f32 %v593_v17, %v592_v60  ;;  %v447_v60 = vadd.f32 %v1130_v5, %v1155_v23  ;;  %v1323_v1 = vpop.f32.mrf.mxu3  ;;  %v541_v17 = vmax.f32 %v438_v37, 0.0 }
 0x10f   :  { %v605_v33 = vsel %vm561_vm1, %v519_v18, 0.0  ;;  %v521_v40 = vmax.f32 %v378_v30, 0.0  ;;  %v653_v23 = vsel %vm561_vm1, %v540_v49, 0.0  ;;  %v607_v7 = vsel %vm561_vm1, %v520_v3, 0.0 }
 0x110   :  { %v644_v28 = vadd.f32 %v643_v13, %v642_v0  ;;  %v596_v29 = vadd.f32 %v595_v22, %v594_v24  ;;  %v384_v24 = vadd.f32 %v1130_v5, %v1201_v63  ;;  %v542_v22 = vmax.f32 %v441_v51, 0.0 }
 0x111   :  { %v543_v13 = vmax.f32 %v444_v54, 0.0  ;;  %v544_v25 = vmax.f32 %v447_v60, 0.0  ;;  %v609_v63 = vsel %vm561_vm1, %v521_v40, 0.0  ;;  %v525_v49 = vmax.f32 %v390_v31, 0.0 }
 0x112   :  { %v646_v34 = vadd.f32 %v645_v35, %v644_v28  ;;  %v598_v15 = vadd.f32 %v597_v50, %v596_v29  ;;  %v522_v28 = vmax.f32 %v381_v55, 0.0  ;;  %v387_v29 = vadd.f32 %v1130_v5, %v1208_v4 }
 0x113   :  { %v453_v35 = vadd.f32 %v1130_v5, %v1169_v38  ;;  %v657_v21 = vsel %vm561_vm1, %v542_v22, 0.0  ;;  %v456_v4 = vadd.f32 %v1130_v5, %v1177_v46  ;;  %v20_v38 = vld [vmem:[%s1429_s1 + $0x30] sm:$0xff]  ;;  %v661_v37 = vsel %vm561_vm1, %v544_v25, 0.0 }
 0x114   :  { %v648_v26 = vadd.f32 %v647_v43, %v646_v34  ;;  %v600_v45 = vadd.f32 %v599_v32, %v598_v15  ;;  %v655_v32 = vsel %vm561_vm1, %v541_v17, 0.0  ;;  %v659_v34 = vsel %vm561_vm1, %v543_v13, 0.0  ;;  %723 = vmatpush.msrb.mxu1 %v20_v38 }
 0x115   :  { %v545_v15 = vmax.f32 %v450_v12, 0.0  ;;  %v611_v43 = vsel %vm561_vm1, %v522_v28, 0.0  ;;  %v524_v42 = vmax.f32 %v387_v29, 0.0  ;;  %v546_v18 = vmax.f32 %v453_v35, 0.0 }
 0x116   :  { %v650_v58 = vadd.f32 %v649_v47, %v648_v26  ;;  %v602_v8 = vadd.f32 %v601_v9, %v600_v45  ;;  %v523_v9 = vmax.f32 %v384_v24, 0.0  ;;  %v1354_v45 = vpop.f32.mrf.mxu3  ;;  %v459_v47 = vadd.f32 %v1130_v5, %v1187_v53 }
 0x117   :  { %v396_v51 = vadd.f32 %v1130_v5, %v1225_v20  ;;  %v663_v54 = vsel %vm561_vm1, %v545_v15, 0.0  ;;  %v547_v14 = vmax.f32 %v456_v4, 0.0  ;;  %v526_v3 = vmax.f32 %v393_v10, 0.0 }
 0x118   :  { %v652_v48 = vadd.f32 %v651_v27, %v650_v58  ;;  %v604_v0 = vadd.f32 %v603_v52, %v602_v8  ;;  %v613_v46 = vsel %vm561_vm1, %v523_v9, 0.0  ;;  %v615_v58 = vsel %vm561_vm1, %v524_v42, 0.0 }
 0x119   :  { %v462_v8 = vadd.f32 %v1130_v5, %v1193_v57  ;;  %v399_v55 = vadd.f32 %v1130_v5, %v1236_v39  ;;  %v665_v53 = vsel %vm561_vm1, %v546_v18, 0.0  ;;  %v617_v20 = vsel %vm561_vm1, %v525_v49, 0.0  ;;  %v28_v18 = vld [vmem:[%s1431_s2 + $0x18] sm:$0xff] }
 0x11a   :  { %v654_v59 = vadd.f32 %v653_v23, %v652_v48  ;;  %v606_v50 = vadd.f32 %v605_v33, %v604_v0  ;;  %v548_v33 = vmax.f32 %v459_v47, 0.0  ;;  %v465_v40 = vadd.f32 %v1130_v5, %v1199_v61  ;;  %745 = vmatpush.msrb.mxu2 %v28_v18 }
 0x11b   :  { %v527_v48 = vmax.f32 %v396_v51, 0.0  ;;  %v667_v0 = vsel %vm561_vm1, %v547_v14, 0.0  ;;  %v549_v57 = vmax.f32 %v462_v8, 0.0  ;;  %v619_v22 = vsel %vm561_vm1, %v526_v3, 0.0 }
 0x11c   :  { %v608_v2 = vadd.f32 %v607_v7, %v606_v50  ;;  %v656_v19 = vadd.f32 %v655_v32, %v654_v59  ;;  %v468_v39 = vadd.f32 %v1130_v5, %v1210_v6  ;;  %v528_v13 = vmax.f32 %v399_v55, 0.0 }
 0x11d   :  { %v669_v59 = vsel %vm561_vm1, %v548_v33, 0.0  ;;  %v550_v50 = vmax.f32 %v465_v40, 0.0  ;;  %v621_v7 = vsel %vm561_vm1, %v527_v48, 0.0  ;;  %v471_v61 = vadd.f32 %v1130_v5, %v1216_v11 }
 0x11e   :  { %v610_v41 = vadd.f32 %v609_v63, %v608_v2  ;;  %v658_v56 = vadd.f32 %v657_v21, %v656_v19  ;;  %v491_v29 = vpop.f32.mrf.mxu3  ;;  %v671_v63 = vsel %vm561_vm1, %v549_v57, 0.0  ;;  %v551_v35 = vmax.f32 %v468_v39, 0.0 }
 0x11f   :  { %v623_v2 = vsel %vm561_vm1, %v528_v13, 0.0  ;;  %v474_v6 = vadd.f32 %v1130_v5, %v1222_v16  ;;  %v673_v31 = vsel %vm561_vm1, %v550_v50, 0.0  ;;  %v552_v21 = vmax.f32 %v471_v61, 0.0 }
 0x120   :  { %v612_v30 = vadd.f32 %v611_v43, %v610_v41  ;;  %v660_v26 = vadd.f32 %v659_v34, %v658_v56  ;;  %v477_v34 = vadd.f32 %v1130_v5, %v1234_v36  ;;  %v675_v15 = vsel %vm561_vm1, %v551_v35, 0.0 }
 0x121   :  { %v553_v4 = vmax.f32 %v474_v6, 0.0  ;;  %v480_v41 = vadd.f32 %v1130_v5, %v1260_v44  ;;  %v677_v38 = vsel %vm561_vm1, %v552_v21, 0.0  ;;  %v483_v16 = vadd.f32 %v1130_v5, %v1290_v62  ;;  %v27_v44 = vld [vmem:[%s1431_s2 + $0x10] sm:$0xff] }
 0x122   :  { %v614_v52 = vadd.f32 %v613_v46, %v612_v30  ;;  %v662_v60 = vadd.f32 %v661_v37, %v660_v26  ;;  %v554_v43 = vmax.f32 %v477_v34, 0.0  ;;  %v486_v36 = vadd.f32 %v1130_v5, %v1323_v1  ;;  %v26_v1 = vld [vmem:[%s1431_s2 + $0x8] sm:$0xff]  ;;  %746 = vmatpush.msrb.mxu2 %v27_v44 }
 0x123   :  { %v679_v10 = vsel %vm561_vm1, %v553_v4, 0.0  ;;  %v555_v37 = vmax.f32 %v480_v41, 0.0  ;;  %v556_v46 = vmax.f32 %v483_v16, 0.0  ;;  %v489_v47 = vadd.f32 %v1130_v5, %v1354_v45 }
 0x124   :  { %v664_v27 = vadd.f32 %v663_v54, %v662_v60  ;;  %v616_v17 = vadd.f32 %v615_v58, %v614_v52  ;;  %v681_v62 = vsel %vm561_vm1, %v554_v43, 0.0  ;;  %v557_v54 = vmax.f32 %v486_v36, 0.0  ;;  %v25_v60 = vld [vmem:[%s1431_s2] sm:$0xff]  ;;  %747 = vmatpush.msrb.mxu2 %v26_v1 }
 0x125   :  { %v683_v51 = vsel %vm561_vm1, %v555_v37, 0.0  ;;  %v492_v14 = vadd.f32 %v1130_v5, %v491_v29  ;;  %v685_v45 = vsel %vm561_vm1, %v556_v46, 0.0  ;;  %v558_v3 = vmax.f32 %v489_v47, 0.0 }
 0x126   :  { %v666_v24 = vadd.f32 %v665_v53, %v664_v27  ;;  %v618_v23 = vadd.f32 %v617_v20, %v616_v17  ;;  %v494_v26 = vpop.f32.mrf.mxu3  ;;  %748 = vmatpush.msrb.mxu2 %v25_v60  ;;  %v687_v53 = vsel %vm561_vm1, %v557_v54, 0.0 }
 0x127   :  { %v495_v52 = vadd.f32 %v1130_v5, %v494_v26  ;;  %v559_v27 = vmax.f32 %v492_v14, 0.0  ;;  %v689_v5 = vsel %vm561_vm1, %v558_v3, 0.0 }
 0x128   :  { %v668_v25 = vadd.f32 %v667_v0, %v666_v24  ;;  %v620_v12 = vadd.f32 %v619_v22, %v618_v23 }
 0x129   :  { %v560_v17 = vmax.f32 %v495_v52, 0.0  ;;  %v691_v48 = vsel %vm561_vm1, %v559_v27, 0.0 }
 0x12a   :  { %v670_v28 = vadd.f32 %v669_v59, %v668_v25  ;;  %v622_v32 = vadd.f32 %v621_v7, %v620_v12 }
 0x12b   :  { %v693_v0 = vsel %vm561_vm1, %v560_v17, 0.0 }
 0x12c   :  { %v672_v19 = vadd.f32 %v671_v63, %v670_v28  ;;  %v624_v9 = vadd.f32 %v623_v2, %v622_v32  ;;  %v840_v63 = vld [vmem:[%s1429_s1 + $0x50] ss:$0 sm:$0xff] }
 0x12e   :  { %v674_v11 = vadd.f32 %v673_v31, %v672_v19  ;;  %v625_v8 = vrot.slane %v624_v9, 4  ;;  %v841_v19 = vld [vmem:[%s1431_s2 + $0x20] ss:$0 sm:$0xff] }
 0x130   :  { %v676_v56 = vadd.f32 %v675_v15, %v674_v11  ;;  %v626_v20 = vadd.f32 %v625_v8, %v624_v9 }
 0x132   :  { %v678_v42 = vadd.f32 %v677_v38, %v676_v56  ;;  %v627_v23 = vrot.slane %v626_v20, 2 }
 0x134   :  { %v680_v30 = vadd.f32 %v679_v10, %v678_v42  ;;  %v628_v39 = vadd.f32 %v627_v23, %v626_v20 }
 0x136   :  { %v682_v49 = vadd.f32 %v681_v62, %v680_v30  ;;  %v629_v12 = vrot.slane %v628_v39, 1 }
 0x138   :  { %v684_v58 = vadd.f32 %v683_v51, %v682_v49  ;;  %v630_v7 = vadd.f32 %v629_v12, %v628_v39 }
 0x13a   :  { %v686_v55 = vadd.f32 %v685_v45, %v684_v58  ;;  %v631_v28 = vmul.f32 0.00390625, %v630_v7 }
 0x13c   :  { %v688_v33 = vadd.f32 %v687_v53, %v686_v55 }
 0x13e   :  { %v690_v40 = vadd.f32 %v689_v5, %v688_v33 }
 0x140   :  { %v692_v24 = vadd.f32 %v691_v48, %v690_v40 }
 0x142   :  { %v694_v57 = vadd.f32 %v693_v0, %v692_v24 }
 0x144   :  { %v695_v22 = vrot.slane %v694_v57, 4 }
 0x146   :  { %v696_v13 = vadd.f32 %v695_v22, %v694_v57 }
 0x148   :  { %v697_v25 = vrot.slane %v696_v13, 2 }
 0x14a   :  { %v698_v59 = vadd.f32 %v697_v25, %v696_v13 }
 0x14c   :  { %v699_v50 = vrot.slane %v698_v59, 1 }
 0x14e   :  { %v700_v61 = vadd.f32 %v699_v50, %v698_v59 }
 0x150   :  { %v701_v29 = vmul.f32 0.00390625, %v700_v61 }
 0x152   :  { %v703_v32 = vsel %vm702_vm2, %v631_v28, %v701_v29 }
 0x153   :  { %822 = vmatmul.msk.f32.vlgmr.msrb.gmra.mxu1 %vm561_vm1, %v703_v32 }
 0x1d0   :  { %v725_v35 = vpop.f32.mrf.mxu1 }
 0x1d1   :  { %v726_v2 = vadd.f32 %v840_v63, %v725_v35 }
 0x1d3   :  { %842 = vtanh.f32 %v726_v2 }
 0x1d9   :  { %v843_v6 = vpop.eup %842 }
 0x1da   :  { %823 = vmatmul.msk.f32.vlgmr.msrb.gmra.mxu2 %vm561_vm1, %v843_v6 }
 0x25d   :  { %v750_v9 = vpop.f32.mrf.mxu2 }
 0x25e   :  { %v751_v31 = vadd.f32 %v841_v19, %v750_v9 }
 0x260   :  { %753 = vst [vmem:[%s1432_s3] sm:$0x3] %v751_v31 }

</bundles_post_ra>
